<compile_context>
chip_gen: v6e
topology: v6e:2x2x1
jax: 0.10.0
libtpu: 0.0.40
codegen_flags: <defaults>
</compile_context>

<pallas_src>
import functools

import jax
import jax.numpy as jnp
from jax import lax
from jax.experimental import pallas as pl
from jax.experimental.pallas import tpu as pltpu


def _dsc_kernel(mid_ref, top_ref, bot_ref, dw_ref, pw_ref, o_ref, slab_ref, *,
                C, TH, W, K, P, HB, use_mxu):
    """One (batch, H-tile) grid step.

    mid_ref : (1, C, TH, W)    current TH-row tile of the image (NCHW)
    top_ref : (1, C, HB, W)    block whose last P rows are the top halo
    bot_ref : (1, C, HB, W)    block whose first P rows are the bottom halo
    dw_ref  : (K*K, C, 1, 1)   depthwise taps, per channel
    pw_ref  : (Cin, Cout, 1, 1) [VPU path]  or  (Cout, Cin) [MXU path]
    o_ref   : (1, C, TH, W)
    slab_ref: (C, TH+2P, W+2P) f32 scratch (zero-padded input slab)
    """
    ht = pl.program_id(1)
    nh = pl.num_programs(1)
    f32 = jnp.float32

    # ---- assemble the zero-padded slab in VMEM -----------------------------
    # Zero covers the W halo columns and any out-of-image halo rows.
    slab_ref[...] = jnp.zeros_like(slab_ref)
    slab_ref[:, P:P + TH, P:P + W] = mid_ref[0].astype(f32)

    @pl.when(ht > 0)
    def _():  # top halo rows are inside the image
        slab_ref[:, 0:P, P:P + W] = top_ref[0, :, HB - P:HB, :].astype(f32)

    @pl.when(ht < nh - 1)
    def _():  # bottom halo rows are inside the image
        slab_ref[:, P + TH:P + TH + P, P:P + W] = bot_ref[0, :, 0:P, :].astype(f32)

    # ---- depthwise kxk: shifted windows read directly off the slab ref -----
    acc = jnp.zeros((C, TH, W), f32)
    for di in range(K):
        for dj in range(K):
            acc = acc + slab_ref[:, di:di + TH, dj:dj + W] * dw_ref[di * K + dj]

    # ---- pointwise 1x1 ------------------------------------------------------
    if use_mxu:
        # Large C: bf16-fed MXU matmul, f32 accumulation (not hit at demo size).
        a16 = acc.reshape(C, TH * W).astype(jnp.bfloat16)
        w16 = pw_ref[...].astype(jnp.bfloat16)                  # (Cout, Cin)
        out = jnp.dot(w16, a16, preferred_element_type=f32).reshape(C, TH, W)
    else:
        # Small C: C broadcast-multiply-adds on the VPU.
        out = jnp.zeros((C, TH, W), f32)
        for ci in range(C):
            out = out + pw_ref[ci] * acc[ci][None]

    o_ref[0] = out.astype(o_ref.dtype)


def _choose_tile_h(H, W, C, p, itemsize, budget_bytes=8 * 1024 * 1024):
    """Largest H-tile (divisor of H, multiple of 8 and of p) fitting the VMEM budget."""
    lane = max(W + 2 * p, 128)

    def cost(th):
        blk = C * th * max(W, 128) * itemsize          # one main in/out block
        halo = C * 8 * max(W, 128) * itemsize          # one halo block
        slab = C * (th + 2 * p) * lane * 4              # f32 scratch slab
        live = 3 * C * th * max(W, 128) * 4             # f32 intermediates
        return 2 * (2 * blk + 2 * halo) + slab + live   # x2 = double buffering

    cands = [H] + [d for d in range(1, H)
                   if H % d == 0 and d % 8 == 0 and d % p == 0]
    fit = [d for d in cands if cost(d) <= budget_bytes]
    return max(fit) if fit else min(cands)


def dsc33_forward(x, dw_weight, pw_weight, *, k=3, tile_h=None):
    """x: (N, C, H, W); dw_weight: (C, 1, k, k); pw_weight: (C, C, 1, 1)."""
    N, C, H, W = x.shape
    assert k % 2 == 1 and 3 <= k <= 17, "odd k in [3, 17] supported"
    p = k // 2
    assert dw_weight.shape == (C, 1, k, k)
    assert pw_weight.shape == (C, C, 1, 1)

    if tile_h is None:
        tile_h = _choose_tile_h(H, W, C, p, x.dtype.itemsize)
    TH = int(tile_h)
    assert H % TH == 0 and (TH % 8 == 0 or TH == H) and TH % p == 0, (
        "tile_h must divide H, be a multiple of 8 (or equal H) and of k//2")
    NH = H // TH
    HB = 8 if TH % 8 == 0 else TH        # halo source block height (rows)
    thb = TH // HB
    nhb = H // HB

    # Tiny weight repacks: channels on the leading dim so per-channel scalars
    # broadcast over the (rows, W) minor dims without relayouts.
    dw4 = jnp.transpose(dw_weight[:, 0], (1, 2, 0)).reshape(k * k, C)
    dw4 = dw4[:, :, None, None].astype(jnp.float32)             # (k*k, C, 1, 1)

    use_mxu = C >= 128
    if use_mxu:
        pw_arg = pw_weight[:, :, 0, 0].astype(jnp.float32)      # (Cout, Cin)
        pw_spec = pl.BlockSpec((C, C), lambda n, h: (0, 0))
    else:
        pw_arg = jnp.transpose(pw_weight[:, :, 0, 0], (1, 0))
        pw_arg = pw_arg[:, :, None, None].astype(jnp.float32)   # (Cin, Cout, 1, 1)
        pw_spec = pl.BlockSpec((C, C, 1, 1), lambda n, h: (0, 0, 0, 0))

    kernel = functools.partial(_dsc_kernel, C=C, TH=TH, W=W, K=k, P=p, HB=HB,
                               use_mxu=use_mxu)

    in_specs = [
        # main TH-row tile
        pl.BlockSpec((1, C, TH, W), lambda n, h: (n, 0, h, 0)),
        # HB-row block containing the top halo rows (index clamped at the edge)
        pl.BlockSpec((1, C, HB, W),
                     lambda n, h: (n, 0, jnp.maximum(h * thb - 1, 0), 0)),
        # HB-row block containing the bottom halo rows (index clamped)
        pl.BlockSpec((1, C, HB, W),
                     lambda n, h: (n, 0, jnp.minimum((h + 1) * thb, nhb - 1), 0)),
        pl.BlockSpec((k * k, C, 1, 1), lambda n, h: (0, 0, 0, 0)),
        pw_spec,
    ]

    out = pl.pallas_call(
        kernel,
        out_shape=jax.ShapeDtypeStruct((N, C, H, W), x.dtype),
        grid_spec=pltpu.PrefetchScalarGridSpec(
            num_scalar_prefetch=0,
            grid=(N, NH),
            in_specs=in_specs,
            out_specs=pl.BlockSpec((1, C, TH, W), lambda n, h: (n, 0, h, 0)),
            scratch_shapes=[pltpu.VMEM((C, TH + 2 * p, W + 2 * p), jnp.float32)],
        ),
        compiler_params=pltpu.CompilerParams(
            dimension_semantics=("parallel", "parallel"),
            vmem_limit_bytes=32 * 1024 * 1024,
        ),
    )(x, x, x, dw4, pw_arg)
    return out


def _reference(x, dw_weight, pw_weight, *, k=3):
    """Pure-JAX reference (lax conv) matching PyTorch NCHW semantics."""
    C = x.shape[1]
    y = lax.conv_general_dilated(
        x, dw_weight, window_strides=(1, 1),
        padding=[(k // 2, k // 2)] * 2, feature_group_count=C,
        dimension_numbers=("NCHW", "OIHW", "NCHW"))
    y = lax.conv_general_dilated(
        y, pw_weight, window_strides=(1, 1), padding=[(0, 0)] * 2,
        dimension_numbers=("NCHW", "OIHW", "NCHW"))
    return y


if __name__ == "__main__":
    N, C, H, W, k = 2, 4, 16, 16, 3

    key = jax.random.PRNGKey(0)
    kx, kd, kp = jax.random.split(key, 3)
    x = jax.random.normal(kx, (N, C, H, W), dtype=jnp.float32)
    dw_weight = jax.random.normal(kd, (C, 1, k, k), dtype=jnp.float32) * 0.1
    pw_weight = jax.random.normal(kp, (C, C, 1, 1), dtype=jnp.float32) * 0.1

    ref = _reference(x, dw_weight, pw_weight, k=k)

    # H-tiled path (2 tiles of 8 rows -> exercises the halo logic).
    out = jax.block_until_ready(
        dsc33_forward(x, dw_weight, pw_weight, k=k, tile_h=8))
    assert out.shape == (N, C, H, W)
    assert jnp.allclose(out, ref, atol=1e-4, rtol=1e-4)

    # Auto tile size (whole image in one tile at this toy size).
    out2 = jax.block_until_ready(dsc33_forward(x, dw_weight, pw_weight, k=k))
    assert jnp.allclose(out2, ref, atol=1e-4, rtol=1e-4)

    print("KERNEL_OK")
</pallas_src>

<mosaic_0001>
module attributes {stable_mosaic.version = 11 : i64} {
  func.func @_dsc_kernel(%arg0: i32, %arg1: i32, %arg2: memref<1x4x8x16xf32, #tpu.memory_space<vmem>>, %arg3: memref<1x4x8x16xf32, #tpu.memory_space<vmem>>, %arg4: memref<1x4x8x16xf32, #tpu.memory_space<vmem>>, %arg5: memref<9x4x1x1xf32, #tpu.memory_space<vmem>>, %arg6: memref<4x4x1x1xf32, #tpu.memory_space<vmem>>, %arg7: memref<1x4x8x16xf32, #tpu.memory_space<vmem>>, %arg8: memref<4x10x18xf32, #tpu.memory_space<vmem>>) attributes {dimension_semantics = [#tpu.dimension_semantics<parallel>, #tpu.dimension_semantics<parallel>], iteration_bounds = array<i64: 2, 2>, scalar_prefetch = 0 : i64, scratch_operands = 1 : i64, tpu.core_type = #tpu.core_type<tc>, window_params = [{transform_indices = @transform_0, window_bounds = array<i64: 1, 4, 8, 16>}, {transform_indices = @transform_1, window_bounds = array<i64: 1, 4, 8, 16>}, {transform_indices = @transform_2, window_bounds = array<i64: 1, 4, 8, 16>}, {pipeline_mode = #tpu.pipeline_mode<synchronous>, transform_indices = @transform_3, window_bounds = array<i64: 9, 4, 1, 1>}, {pipeline_mode = #tpu.pipeline_mode<synchronous>, transform_indices = @transform_4, window_bounds = array<i64: 4, 4, 1, 1>}, {transform_indices = @transform_5, window_bounds = array<i64: 1, 4, 8, 16>}]} {
    %cst = arith.constant 0.000000e+00 : f32
    %0 = vector.broadcast %cst : f32 to vector<4x10x18xf32>
    %c0 = arith.constant 0 : index
    %c0_0 = arith.constant 0 : index
    %c0_1 = arith.constant 0 : index
    %1 = vector.load %arg8[%c0, %c0_0, %c0_1] : memref<4x10x18xf32, #tpu.memory_space<vmem>>, vector<4x10x18xf32>
    tpu.vector_store %arg8[%c0, %c0_0, %c0_1], %0 {strides = array<i32>} : memref<4x10x18xf32, #tpu.memory_space<vmem>>, vector<4x10x18xf32>,
    %c0_2 = arith.constant 0 : index
    %c0_3 = arith.constant 0 : index
    %c0_4 = arith.constant 0 : index
    %c0_5 = arith.constant 0 : index
    %2 = vector.load %arg2[%c0_2, %c0_3, %c0_4, %c0_5] : memref<1x4x8x16xf32, #tpu.memory_space<vmem>>, vector<1x4x8x16xf32>
    %3 = vector.shape_cast %2 : vector<1x4x8x16xf32> to vector<4x8x16xf32>
    %c0_6 = arith.constant 0 : index
    %c1 = arith.constant 1 : index
    %c1_7 = arith.constant 1 : index
    %4 = vector.load %arg8[%c0_6, %c1, %c1_7] : memref<4x10x18xf32, #tpu.memory_space<vmem>>, vector<4x8x16xf32>
    tpu.vector_store %arg8[%c0_6, %c1, %c1_7], %3 {strides = array<i32>} : memref<4x10x18xf32, #tpu.memory_space<vmem>>, vector<4x8x16xf32>,
    %c0_i32 = arith.constant 0 : i32
    %5 = arith.cmpi sgt, %arg1, %c0_i32 : i32
    %6 = arith.extui %5 : i1 to i32
    %c0_i32_8 = arith.constant 0 : i32
    %7 = arith.cmpi ne, %6, %c0_i32_8 : i32
    scf.if %7 {
      %c0_88 = arith.constant 0 : index
      %c0_89 = arith.constant 0 : index
      %c7_90 = arith.constant 7 : index
      %c0_91 = arith.constant 0 : index
      %106 = vector.load %arg3[%c0_88, %c0_89, %c7_90, %c0_91] : memref<1x4x8x16xf32, #tpu.memory_space<vmem>>, vector<1x4x1x16xf32>
      %107 = vector.shape_cast %106 : vector<1x4x1x16xf32> to vector<4x1x16xf32>
      %c0_92 = arith.constant 0 : index
      %c0_93 = arith.constant 0 : index
      %c1_94 = arith.constant 1 : index
      %108 = vector.load %arg8[%c0_92, %c0_93, %c1_94] : memref<4x10x18xf32, #tpu.memory_space<vmem>>, vector<4x1x16xf32>
      tpu.vector_store %arg8[%c0_92, %c0_93, %c1_94], %107 {strides = array<i32>} : memref<4x10x18xf32, #tpu.memory_space<vmem>>, vector<4x1x16xf32>,
    } else {
    }
    %c1_i32 = arith.constant 1 : i32
    %8 = arith.cmpi slt, %arg1, %c1_i32 : i32
    %9 = arith.extui %8 : i1 to i32
    %c0_i32_9 = arith.constant 0 : i32
    %10 = arith.cmpi ne, %9, %c0_i32_9 : i32
    scf.if %10 {
      %c0_88 = arith.constant 0 : index
      %c0_89 = arith.constant 0 : index
      %c0_90 = arith.constant 0 : index
      %c0_91 = arith.constant 0 : index
      %106 = vector.load %arg4[%c0_88, %c0_89, %c0_90, %c0_91] : memref<1x4x8x16xf32, #tpu.memory_space<vmem>>, vector<1x4x1x16xf32>
      %107 = vector.shape_cast %106 : vector<1x4x1x16xf32> to vector<4x1x16xf32>
      %c0_92 = arith.constant 0 : index
      %c9 = arith.constant 9 : index
      %c1_93 = arith.constant 1 : index
      %108 = vector.load %arg8[%c0_92, %c9, %c1_93] : memref<4x10x18xf32, #tpu.memory_space<vmem>>, vector<4x1x16xf32>
      tpu.vector_store %arg8[%c0_92, %c9, %c1_93], %107 {strides = array<i32>} : memref<4x10x18xf32, #tpu.memory_space<vmem>>, vector<4x1x16xf32>,
    } else {
    }
    %cst_10 = arith.constant 0.000000e+00 : f32
    %11 = vector.broadcast %cst_10 : f32 to vector<4x8x16xf32>
    %c0_11 = arith.constant 0 : index
    %c0_12 = arith.constant 0 : index
    %c0_13 = arith.constant 0 : index
    %12 = vector.load %arg8[%c0_11, %c0_12, %c0_13] : memref<4x10x18xf32, #tpu.memory_space<vmem>>, vector<4x8x16xf32>
    %c0_14 = arith.constant 0 : index
    %c0_15 = arith.constant 0 : index
    %c0_16 = arith.constant 0 : index
    %c0_17 = arith.constant 0 : index
    %13 = vector.load %arg5[%c0_14, %c0_15, %c0_16, %c0_17] : memref<9x4x1x1xf32, #tpu.memory_space<vmem>>, vector<1x4x1x1xf32>
    %14 = vector.shape_cast %13 : vector<1x4x1x1xf32> to vector<4x1x1xf32>
    %15 = vector.broadcast %14 : vector<4x1x1xf32> to vector<4x8x16xf32>
    %16 = arith.mulf %12, %15 : vector<4x8x16xf32>
    %17 = arith.addf %11, %16 : vector<4x8x16xf32>
    %c0_18 = arith.constant 0 : index
    %c0_19 = arith.constant 0 : index
    %c1_20 = arith.constant 1 : index
    %18 = vector.load %arg8[%c0_18, %c0_19, %c1_20] : memref<4x10x18xf32, #tpu.memory_space<vmem>>, vector<4x8x16xf32>
    %c1_21 = arith.constant 1 : index
    %c0_22 = arith.constant 0 : index
    %c0_23 = arith.constant 0 : index
    %c0_24 = arith.constant 0 : index
    %19 = vector.load %arg5[%c1_21, %c0_22, %c0_23, %c0_24] : memref<9x4x1x1xf32, #tpu.memory_space<vmem>>, vector<1x4x1x1xf32>
    %20 = vector.shape_cast %19 : vector<1x4x1x1xf32> to vector<4x1x1xf32>
    %21 = vector.broadcast %20 : vector<4x1x1xf32> to vector<4x8x16xf32>
    %22 = arith.mulf %18, %21 : vector<4x8x16xf32>
    %23 = arith.addf %17, %22 : vector<4x8x16xf32>
    %c0_25 = arith.constant 0 : index
    %c0_26 = arith.constant 0 : index
    %c2 = arith.constant 2 : index
    %24 = vector.load %arg8[%c0_25, %c0_26, %c2] : memref<4x10x18xf32, #tpu.memory_space<vmem>>, vector<4x8x16xf32>
    %c2_27 = arith.constant 2 : index
    %c0_28 = arith.constant 0 : index
    %c0_29 = arith.constant 0 : index
    %c0_30 = arith.constant 0 : index
    %25 = vector.load %arg5[%c2_27, %c0_28, %c0_29, %c0_30] : memref<9x4x1x1xf32, #tpu.memory_space<vmem>>, vector<1x4x1x1xf32>
    %26 = vector.shape_cast %25 : vector<1x4x1x1xf32> to vector<4x1x1xf32>
    %27 = vector.broadcast %26 : vector<4x1x1xf32> to vector<4x8x16xf32>
    %28 = arith.mulf %24, %27 : vector<4x8x16xf32>
    %29 = arith.addf %23, %28 : vector<4x8x16xf32>
    %c0_31 = arith.constant 0 : index
    %c1_32 = arith.constant 1 : index
    %c0_33 = arith.constant 0 : index
    %30 = vector.load %arg8[%c0_31, %c1_32, %c0_33] : memref<4x10x18xf32, #tpu.memory_space<vmem>>, vector<4x8x16xf32>
    %c3 = arith.constant 3 : index
    %c0_34 = arith.constant 0 : index
    %c0_35 = arith.constant 0 : index
    %c0_36 = arith.constant 0 : index
    %31 = vector.load %arg5[%c3, %c0_34, %c0_35, %c0_36] : memref<9x4x1x1xf32, #tpu.memory_space<vmem>>, vector<1x4x1x1xf32>
    %32 = vector.shape_cast %31 : vector<1x4x1x1xf32> to vector<4x1x1xf32>
    %33 = vector.broadcast %32 : vector<4x1x1xf32> to vector<4x8x16xf32>
    %34 = arith.mulf %30, %33 : vector<4x8x16xf32>
    %35 = arith.addf %29, %34 : vector<4x8x16xf32>
    %c0_37 = arith.constant 0 : index
    %c1_38 = arith.constant 1 : index
    %c1_39 = arith.constant 1 : index
    %36 = vector.load %arg8[%c0_37, %c1_38, %c1_39] : memref<4x10x18xf32, #tpu.memory_space<vmem>>, vector<4x8x16xf32>
    %c4 = arith.constant 4 : index
    %c0_40 = arith.constant 0 : index
    %c0_41 = arith.constant 0 : index
    %c0_42 = arith.constant 0 : index
    %37 = vector.load %arg5[%c4, %c0_40, %c0_41, %c0_42] : memref<9x4x1x1xf32, #tpu.memory_space<vmem>>, vector<1x4x1x1xf32>
    %38 = vector.shape_cast %37 : vector<1x4x1x1xf32> to vector<4x1x1xf32>
    %39 = vector.broadcast %38 : vector<4x1x1xf32> to vector<4x8x16xf32>
    %40 = arith.mulf %36, %39 : vector<4x8x16xf32>
    %41 = arith.addf %35, %40 : vector<4x8x16xf32>
    %c0_43 = arith.constant 0 : index
    %c1_44 = arith.constant 1 : index
    %c2_45 = arith.constant 2 : index
    %42 = vector.load %arg8[%c0_43, %c1_44, %c2_45] : memref<4x10x18xf32, #tpu.memory_space<vmem>>, vector<4x8x16xf32>
    %c5 = arith.constant 5 : index
    %c0_46 = arith.constant 0 : index
    %c0_47 = arith.constant 0 : index
    %c0_48 = arith.constant 0 : index
    %43 = vector.load %arg5[%c5, %c0_46, %c0_47, %c0_48] : memref<9x4x1x1xf32, #tpu.memory_space<vmem>>, vector<1x4x1x1xf32>
    %44 = vector.shape_cast %43 : vector<1x4x1x1xf32> to vector<4x1x1xf32>
    %45 = vector.broadcast %44 : vector<4x1x1xf32> to vector<4x8x16xf32>
    %46 = arith.mulf %42, %45 : vector<4x8x16xf32>
    %47 = arith.addf %41, %46 : vector<4x8x16xf32>
    %c0_49 = arith.constant 0 : index
    %c2_50 = arith.constant 2 : index
    %c0_51 = arith.constant 0 : index
    %48 = vector.load %arg8[%c0_49, %c2_50, %c0_51] : memref<4x10x18xf32, #tpu.memory_space<vmem>>, vector<4x8x16xf32>
    %c6 = arith.constant 6 : index
    %c0_52 = arith.constant 0 : index
    %c0_53 = arith.constant 0 : index
    %c0_54 = arith.constant 0 : index
    %49 = vector.load %arg5[%c6, %c0_52, %c0_53, %c0_54] : memref<9x4x1x1xf32, #tpu.memory_space<vmem>>, vector<1x4x1x1xf32>
    %50 = vector.shape_cast %49 : vector<1x4x1x1xf32> to vector<4x1x1xf32>
    %51 = vector.broadcast %50 : vector<4x1x1xf32> to vector<4x8x16xf32>
    %52 = arith.mulf %48, %51 : vector<4x8x16xf32>
    %53 = arith.addf %47, %52 : vector<4x8x16xf32>
    %c0_55 = arith.constant 0 : index
    %c2_56 = arith.constant 2 : index
    %c1_57 = arith.constant 1 : index
    %54 = vector.load %arg8[%c0_55, %c2_56, %c1_57] : memref<4x10x18xf32, #tpu.memory_space<vmem>>, vector<4x8x16xf32>
    %c7 = arith.constant 7 : index
    %c0_58 = arith.constant 0 : index
    %c0_59 = arith.constant 0 : index
    %c0_60 = arith.constant 0 : index
    %55 = vector.load %arg5[%c7, %c0_58, %c0_59, %c0_60] : memref<9x4x1x1xf32, #tpu.memory_space<vmem>>, vector<1x4x1x1xf32>
    %56 = vector.shape_cast %55 : vector<1x4x1x1xf32> to vector<4x1x1xf32>
    %57 = vector.broadcast %56 : vector<4x1x1xf32> to vector<4x8x16xf32>
    %58 = arith.mulf %54, %57 : vector<4x8x16xf32>
    %59 = arith.addf %53, %58 : vector<4x8x16xf32>
    %c0_61 = arith.constant 0 : index
    %c2_62 = arith.constant 2 : index
    %c2_63 = arith.constant 2 : index
    %60 = vector.load %arg8[%c0_61, %c2_62, %c2_63] : memref<4x10x18xf32, #tpu.memory_space<vmem>>, vector<4x8x16xf32>
    %c8 = arith.constant 8 : index
    %c0_64 = arith.constant 0 : index
    %c0_65 = arith.constant 0 : index
    %c0_66 = arith.constant 0 : index
    %61 = vector.load %arg5[%c8, %c0_64, %c0_65, %c0_66] : memref<9x4x1x1xf32, #tpu.memory_space<vmem>>, vector<1x4x1x1xf32>
    %62 = vector.shape_cast %61 : vector<1x4x1x1xf32> to vector<4x1x1xf32>
    %63 = vector.broadcast %62 : vector<4x1x1xf32> to vector<4x8x16xf32>
    %64 = arith.mulf %60, %63 : vector<4x8x16xf32>
    %65 = arith.addf %59, %64 : vector<4x8x16xf32>
    %cst_67 = arith.constant 0.000000e+00 : f32
    %66 = vector.broadcast %cst_67 : f32 to vector<4x8x16xf32>
    %c0_68 = arith.constant 0 : index
    %c0_69 = arith.constant 0 : index
    %c0_70 = arith.constant 0 : index
    %c0_71 = arith.constant 0 : index
    %67 = vector.load %arg6[%c0_68, %c0_69, %c0_70, %c0_71] : memref<4x4x1x1xf32, #tpu.memory_space<vmem>>, vector<1x4x1x1xf32>
    %68 = vector.shape_cast %67 : vector<1x4x1x1xf32> to vector<4x1x1xf32>
    %69 = vector.extract_strided_slice %65 {offsets = [0, 0, 0], sizes = [1, 8, 16], strides = [1, 1, 1]} : vector<4x8x16xf32> to vector<1x8x16xf32>
    %70 = vector.shape_cast %69 : vector<1x8x16xf32> to vector<8x16xf32>
    %71 = vector.shape_cast %70 : vector<8x16xf32> to vector<1x8x16xf32>
    %72 = vector.broadcast %68 : vector<4x1x1xf32> to vector<4x8x16xf32>
    %73 = vector.broadcast %71 : vector<1x8x16xf32> to vector<4x8x16xf32>
    %74 = arith.mulf %72, %73 : vector<4x8x16xf32>
    %75 = arith.addf %66, %74 : vector<4x8x16xf32>
    %c1_72 = arith.constant 1 : index
    %c0_73 = arith.constant 0 : index
    %c0_74 = arith.constant 0 : index
    %c0_75 = arith.constant 0 : index
    %76 = vector.load %arg6[%c1_72, %c0_73, %c0_74, %c0_75] : memref<4x4x1x1xf32, #tpu.memory_space<vmem>>, vector<1x4x1x1xf32>
    %77 = vector.shape_cast %76 : vector<1x4x1x1xf32> to vector<4x1x1xf32>
    %78 = vector.extract_strided_slice %65 {offsets = [1, 0, 0], sizes = [1, 8, 16], strides = [1, 1, 1]} : vector<4x8x16xf32> to vector<1x8x16xf32>
    %79 = vector.shape_cast %78 : vector<1x8x16xf32> to vector<8x16xf32>
    %80 = vector.shape_cast %79 : vector<8x16xf32> to vector<1x8x16xf32>
    %81 = vector.broadcast %77 : vector<4x1x1xf32> to vector<4x8x16xf32>
    %82 = vector.broadcast %80 : vector<1x8x16xf32> to vector<4x8x16xf32>
    %83 = arith.mulf %81, %82 : vector<4x8x16xf32>
    %84 = arith.addf %75, %83 : vector<4x8x16xf32>
    %c2_76 = arith.constant 2 : index
    %c0_77 = arith.constant 0 : index
    %c0_78 = arith.constant 0 : index
    %c0_79 = arith.constant 0 : index
    %85 = vector.load %arg6[%c2_76, %c0_77, %c0_78, %c0_79] : memref<4x4x1x1xf32, #tpu.memory_space<vmem>>, vector<1x4x1x1xf32>
    %86 = vector.shape_cast %85 : vector<1x4x1x1xf32> to vector<4x1x1xf32>
    %87 = vector.extract_strided_slice %65 {offsets = [2, 0, 0], sizes = [1, 8, 16], strides = [1, 1, 1]} : vector<4x8x16xf32> to vector<1x8x16xf32>
    %88 = vector.shape_cast %87 : vector<1x8x16xf32> to vector<8x16xf32>
    %89 = vector.shape_cast %88 : vector<8x16xf32> to vector<1x8x16xf32>
    %90 = vector.broadcast %86 : vector<4x1x1xf32> to vector<4x8x16xf32>
    %91 = vector.broadcast %89 : vector<1x8x16xf32> to vector<4x8x16xf32>
    %92 = arith.mulf %90, %91 : vector<4x8x16xf32>
    %93 = arith.addf %84, %92 : vector<4x8x16xf32>
    %c3_80 = arith.constant 3 : index
    %c0_81 = arith.constant 0 : index
    %c0_82 = arith.constant 0 : index
    %c0_83 = arith.constant 0 : index
    %94 = vector.load %arg6[%c3_80, %c0_81, %c0_82, %c0_83] : memref<4x4x1x1xf32, #tpu.memory_space<vmem>>, vector<1x4x1x1xf32>
    %95 = vector.shape_cast %94 : vector<1x4x1x1xf32> to vector<4x1x1xf32>
    %96 = vector.extract_strided_slice %65 {offsets = [3, 0, 0], sizes = [1, 8, 16], strides = [1, 1, 1]} : vector<4x8x16xf32> to vector<1x8x16xf32>
    %97 = vector.shape_cast %96 : vector<1x8x16xf32> to vector<8x16xf32>
    %98 = vector.shape_cast %97 : vector<8x16xf32> to vector<1x8x16xf32>
    %99 = vector.broadcast %95 : vector<4x1x1xf32> to vector<4x8x16xf32>
    %100 = vector.broadcast %98 : vector<1x8x16xf32> to vector<4x8x16xf32>
    %101 = arith.mulf %99, %100 : vector<4x8x16xf32>
    %102 = arith.addf %93, %101 : vector<4x8x16xf32>
    %c0_84 = arith.constant 0 : index
    %c0_85 = arith.constant 0 : index
    %c0_86 = arith.constant 0 : index
    %c0_87 = arith.constant 0 : index
    %103 = vector.load %arg7[%c0_84, %c0_85, %c0_86, %c0_87] : memref<1x4x8x16xf32, #tpu.memory_space<vmem>>, vector<1x4x8x16xf32>
    %104 = vector.shape_cast %103 : vector<1x4x8x16xf32> to vector<4x8x16xf32>
    %105 = vector.shape_cast %102 : vector<4x8x16xf32> to vector<1x4x8x16xf32>
    tpu.vector_store %arg7[%c0_84, %c0_85, %c0_86, %c0_87], %105 {strides = array<i32>} : memref<1x4x8x16xf32, #tpu.memory_space<vmem>>, vector<1x4x8x16xf32>,
    return
  }
  func.func @transform_0(%arg0: i32, %arg1: i32) -> (i32, i32, i32, i32) {
    %c0_i32 = arith.constant 0 : i32
    %c0_i32_0 = arith.constant 0 : i32
    %c0_i32_1 = arith.constant 0 : i32
    return %arg0, %c0_i32, %arg1, %c0_i32_0 : i32, i32, i32, i32
  }
  func.func @transform_1(%arg0: i32, %arg1: i32) -> (i32, i32, i32, i32) {
    %c1_i32 = arith.constant 1 : i32
    %0 = arith.muli %arg1, %c1_i32 : i32
    %c1_i32_0 = arith.constant 1 : i32
    %1 = arith.subi %0, %c1_i32_0 : i32
    %c0_i32 = arith.constant 0 : i32
    %2 = arith.maxsi %1, %c0_i32 : i32
    %c0_i32_1 = arith.constant 0 : i32
    %c0_i32_2 = arith.constant 0 : i32
    %c0_i32_3 = arith.constant 0 : i32
    return %arg0, %c0_i32_1, %2, %c0_i32_2 : i32, i32, i32, i32
  }
  func.func @transform_2(%arg0: i32, %arg1: i32) -> (i32, i32, i32, i32) {
    %c1_i32 = arith.constant 1 : i32
    %0 = arith.addi %arg1, %c1_i32 : i32
    %c1_i32_0 = arith.constant 1 : i32
    %1 = arith.muli %0, %c1_i32_0 : i32
    %c1_i32_1 = arith.constant 1 : i32
    %2 = arith.minsi %1, %c1_i32_1 : i32
    %c0_i32 = arith.constant 0 : i32
    %c0_i32_2 = arith.constant 0 : i32
    %c0_i32_3 = arith.constant 0 : i32
    return %arg0, %c0_i32, %2, %c0_i32_2 : i32, i32, i32, i32
  }
  func.func @transform_3(%arg0: i32, %arg1: i32) -> (i32, i32, i32, i32) {
    %c0_i32 = arith.constant 0 : i32
    %c0_i32_0 = arith.constant 0 : i32
    %c0_i32_1 = arith.constant 0 : i32
    %c0_i32_2 = arith.constant 0 : i32
    %c0_i32_3 = arith.constant 0 : i32
    return %c0_i32, %c0_i32_0, %c0_i32_1, %c0_i32_2 : i32, i32, i32, i32
  }
  func.func @transform_4(%arg0: i32, %arg1: i32) -> (i32, i32, i32, i32) {
    %c0_i32 = arith.constant 0 : i32
    %c0_i32_0 = arith.constant 0 : i32
    %c0_i32_1 = arith.constant 0 : i32
    %c0_i32_2 = arith.constant 0 : i32
    %c0_i32_3 = arith.constant 0 : i32
    return %c0_i32, %c0_i32_0, %c0_i32_1, %c0_i32_2 : i32, i32, i32, i32
  }
  func.func @transform_5(%arg0: i32, %arg1: i32) -> (i32, i32, i32, i32) {
    %c0_i32 = arith.constant 0 : i32
    %c0_i32_0 = arith.constant 0 : i32
    %c0_i32_1 = arith.constant 0 : i32
    return %arg0, %c0_i32, %arg1, %c0_i32_0 : i32, i32, i32, i32
  }
}

</mosaic_0001>

<bundles_post_ra>
// kernel: tpu_custom_call.1
= control target key start
LH: loop header
LB: loop body
LE: loop exit
PB: predicated region body
PF: predicated region fallthrough
CT: control target
= control target key end

     0   :  { %s2535_s0 = inlined_call_operand.hbm [shape: f32[2,4,16,16], index: 0, kind: input, shape index: {}]   ;;  %s2536_s1 = inlined_call_operand.hbm [shape: f32[2,4,16,16], index: 1, kind: input, shape index: {}]   ;;  %s2537_s2 = inlined_call_operand.hbm [shape: f32[2,4,16,16], index: 2, kind: input, shape index: {}]   ;;  %s2538_s3 = inlined_call_operand.vmem [shape: f32[9,4,1,1], index: 3, kind: input, shape index: {}]   ;;  %s2539_s4 = inlined_call_operand.vmem [shape: f32[4,4,1,1], index: 4, kind: input, shape index: {}]   ;;  %s2540_s5 = inlined_call_operand.hbm [shape: f32[2,4,16,16], index: 5, kind: output, shape index: {}]  }
   0x1   :  { %2563 = sst [smem:[#allocation24_spill]] %s2535_s0 }
   0x2   :  { %2564 = sst [smem:[#allocation25_spill]] %s2536_s1 }
   0x3   :  { %2565 = sst [smem:[#allocation26_spill]] %s2538_s3 }
   0x4   :  { %2566 = sst [smem:[#allocation27_spill]] %s2539_s4 }
   0x5   :  { %2567 = sst [smem:[#allocation28_spill]] %s2540_s5 }
   0x6   :  { %10 = vsyncpa [#allocation4], 0 }
   0x7   :  { %12 = vsyncpa [#allocation4 + $0x1], 0 }
   0x8   :  { %13 = vsyncpa [#allocation7], 0 }
   0x9   :  { %15 = vsyncpa [#allocation7 + $0x1], 0 }
   0xa   :  { %16 = vsyncpa [#allocation5], 0 }
   0xb   :  { %18 = vsyncpa [#allocation5 + $0x1], 0  ;;  %s1922_s18 = smov 0   ;;  %s1924_s19 = smov 0  }
   0xc   :  { %s1926_s20 = smov 0   ;;  %s1928_s21 = smov 0  }
   0xd   :  { %s1930_s22 = smov 0   ;;  %s1932_s23 = smov 0  }
   0xe   :  { %s1934_s24 = smov 0   ;;  %s1936_s25 = smov 0  }
   0xf   :  { %s1938_s26 = smov 0   ;;  %s1940_s27 = smov 0  }
  0x10   :  { %s1942_s28 = smov 0   ;;  %s1944_s29 = smov 0  }
  0x11   :  { %s1946_s30 = smov 0   ;;  %s1948_s6 = smov 0  }
  0x12 LB: > { %2568 = sst [smem:[#allocation14_spill]] %s1841_s23  ;;  %s1991_s7 = sadd.s32 4294967295, %s1873_s6   ;;  %s1873_s6 = sphi %s1948_s6, %s24_s6   ;;  %s1869_s30 = sphi %s1946_s30, %s2636_s30   ;;  %s1865_s29 = sphi %s1944_s29, %s2635_s29   ;;  %s1861_s28 = sphi %s1942_s28, %s2634_s28   ;;  %s1857_s27 = sphi %s1940_s27, %s2633_s27   ;;  %s1853_s26 = sphi %s1938_s26, %s2621_s26   ;;  %s1849_s25 = sphi %s1936_s25, %s2632_s25   ;;  %s1845_s24 = sphi %s1934_s24, %s2631_s24   ;;  %s1841_s23 = sphi %s1932_s23, %s2619_s23   ;;  %s1837_s22 = sphi %s1930_s22, %s2630_s22   ;;  %s1833_s21 = sphi %s1928_s21, %s2629_s21   ;;  %s1829_s20 = sphi %s1926_s20, %s2628_s20   ;;  %s1825_s19 = sphi %s1924_s19, %s2627_s19   ;;  %s1821_s18 = sphi %s1922_s18, %s2626_s18  }
  0x13   : > { %2569 = sst [smem:[#allocation15_spill]] %s1845_s24  ;;  %s33_s8 = sadd.s32 1, %s1865_s29 }
  0x14   : > { %2570 = sst [smem:[#allocation16_spill]] %s1853_s26  ;;  %p34_p0 = scmp.ge.s32.totalorder %s33_s8, 2 }
  0x15   : > { %2571 = sst [smem:[#allocation17_spill]] %s1857_s27  ;;  %s36_s9 = sadd.s32 1, %s1869_s30 }
  0x16   : > { %2572 = sst [smem:[#allocation18_spill]] %s1861_s28  ;;  %p2550_p1 = scmp.eq.s32.totalorder %s1873_s6, 0 }
  0x17   : > { %2573 = sst [smem:[#allocation19_spill]] %s1865_s29  ;;  %p2549_p2 = scmp.eq.s32.totalorder %s1991_s7, 0 }
  0x18   : > { %s2638_s8 = smov (%p34_p0, %s33_s8), 0  ;;  %s2640_s9 = smov (!%p34_p0, %s36_s9), %s1869_s30 }
  0x19   : > { %2574 = sst [smem:[#allocation20_spill]] %s2638_s8  ;;  %s41_s10 = ssub.s32 %s1865_s29, %s2638_s8 }
  0x1a   : > { %p38_p3 = scmp.ge.s32.totalorder %s2640_s9, 2  ;;  %s79_s11 = sadd.s32 1, %s1841_s23 }
  0x1b   : > { %p86_p4 = scmp.ne.s32.totalorder %s1841_s23, %s1837_s22  ;;  %p92_p6 = scmp.ne.s32.totalorder %s1837_s22, %s1833_s21 }
  0x1c   : > { %s2642_s9 = smov (%p38_p3, %s2640_s9), 0  ;;  %p2548_p9 = scmp.lt.s32.totalorder %s1873_s6, 4 }
  0x1d   : > { %2575 = sst [smem:[#allocation21_spill]] %s2642_s9  ;;  %s2007_s12 = ssub.s32 %s1869_s30, %s2642_s9 }
  0x1e   : > { %s2010_s13 = sor.u32 %s41_s10, %s2007_s12  ;;  %p2018_p7 = por %p86_p4, %p2550_p1 }
  0x1f   : > { %p2024_p8 = por %p92_p6, %p2549_p2  ;;  %p2547_p10 = scmp.eq.s32.totalorder %s2007_s12, 0 }
  0x20   : > { %s248_s21 = sand.u32 1, %s1873_s6   ;;  %s250_s10 = sand.u32 1, %s1841_s23  }
  0x21   : > { %s2577_s15 = scalar_select %p2024_p8, 1, 0 }
  0x22   : > { %s2034_s17 = scalar_select %p2547_p10, %s1841_s23, %s79_s11  }
  0x23   : > { %s1367_s9 = sshll.u32 %s250_s10, 5  ;;  %s2546_s8 = sshll.u32 %s1869_s30, 10 }
  0x24   : > { %2578 = sst [smem:[#allocation22_spill]] %s2034_s17  ;;  %s252_s3 = scalar_lea.vmem [#allocation6], %s1367_s9 }
  0x25   : > { %s2579_s1 = sld [smem:[#allocation25_spill]]  ;;  %s263_s27 = sshll.u32 %s252_s3, 4  ;;  %s2046_s27 = int_to_ptr.vmem [resolvable:$true] %s263_s27 }
  0x26   : > { %p2052_p11 = pnand %p2548_p9, %p2018_p7  ;;  %s2058_s10 = scalar_lea.sflag [#allocation7], %s248_s21 }
  0x28   : > { %p1635_p3 = pneg %p2052_p11 }
  0x2b   : > { %s2044_s4 = scalar_lea.hbm %s2579_s1, %s2546_s8  ;;  %s1638_s9 = scalar_lea.hbm %s2579_s1, 2048 }
  0x2c   : > { %s1633_s5 = scalar_lea.hbm %s2044_s4, 512  ;;  %p1639_p7 = scmp.lt.s32.totalorder %s2044_s4, %s2579_s1 }
  0x2d   : > { %p1634_p0 = scmp.ne.s32.totalorder %s2044_s4, %s1633_s5  ;;  %p1640_p10 = scmp.lt.s32.totalorder %s1638_s9, %s1633_s5 }
  0x2f   : > { %p1636_p4 = pnand %p1635_p3, %p1634_p0  ;;  %p1641_p9 = por %p1640_p10, %p1639_p7 }
  0x31   : > { %p1637_p6 = pneg %p1636_p4 }
  0x33   : > { %p1642_p2 = pnand %p1641_p9, %p1637_p6 }
  0x35   : > { %1645 = shalt.err (!%p1642_p2)
}
  0x36   : > { %s1646_s21 = scalar_lea.vmem %s2046_s27, 512  ;;  %s1875_s16 = smov [#allocation6]  }
  0x37   : > { %p1647_p1 = scmp.ne.s32.totalorder %s2046_s27, %s1646_s21  ;;  %s1651_s17 = sshll.u32 %s1875_s16, 4  ;;  %s1652_s17 = int_to_ptr.vmem [resolvable:$false] %s1651_s17 }
  0x38   : > { %s1653_s3 = scalar_lea.vmem %s1652_s17, 1024  ;;  %p1654_p4 = scmp.lt.s32.totalorder %s2046_s27, %s1652_s17 }
  0x39   : > { %p1649_p5 = pnand %p1647_p1, %p1635_p3  ;;  %p1655_p12 = scmp.lt.s32.totalorder %s1653_s3, %s1646_s21 }
  0x3b   : > { %p1650_p0 = pneg %p1649_p5  ;;  %p1656_p13 = por %p1655_p12, %p1654_p4 }
  0x3d   : > { %p1657_p8 = pnand %p1656_p13, %p1650_p0 }
  0x3f   : > { %1660 = shalt.err (!%p1657_p8)
}
  0x40   : > { %s2552_s8 = smov 256   ;;  %s2554_s16 = smov 128  }
  0x41   : > { %s2556_s17 = smov 8   ;;  %p2581_p1 = scmp.lt.s32.totalorder %s1873_s6, 5 }
  0x42   : > { %1496 = dma.hbm_to_vmem [thread:$0]  (!%p2052_p11), %s2044_s4, 512, %s2046_s27, %s2058_s10, %s2552_s8, %s2554_s16, %s2556_s17  }
  0x43   : > { %p2582_p2 = scmp.ge.s32.totalorder %s1873_s6, 1  ;;  %s1359_s28 = sadd.s32 4294967294, %s1873_s6  }
  0x44   : > { %s45_s9 = sadd.s32 1, %s1853_s26  ;;  %p2584_p8 = scmp.eq.s32.totalorder %s2010_s13, 0 }
  0x45   : > { %p2086_p5 = pnand %p2582_p2, %p2581_p1  ;;  %p52_p9 = scmp.ne.s32.totalorder %s1853_s26, %s1849_s25 }
  0x46   : > { %s2095_s14 = scalar_select %p2584_p8, %s1853_s26, %s45_s9  }
  0x47   : > { %p58_p10 = scmp.ne.s32.totalorder %s1849_s25, %s1845_s24  ;;  %p194_p12 = scmp.eq.s32.totalorder %s1991_s7, 3 }
  0x48   : > { %2585 = sst [smem:[#allocation23_spill]] %s2095_s14  ;;  %p200_p13 = scmp.eq.s32.totalorder %s1359_s28, 3 }
  0x49   : > { %p2586_p3 = scmp.eq.s32.totalorder %s1873_s6, 0  ;;  %p2587_p7 = scmp.eq.s32.totalorder %s1991_s7, 0 }
  0x4a   : > { %p2110_p0 = por %p194_p12, %p52_p9  ;;  %p2114_p4 = por %p200_p13, %p58_p10 }
  0x4b   : > { %p54_p6 = por %p2586_p3, %p52_p9  ;;  %p2106_p11 = por %p2587_p7, %p58_p10 }
  0x4c   : > { %s2589_s27 = scalar_select %p2110_p0, 1, 0 }
  0x4d   : > { %s2590_s13 = scalar_select %p2114_p4, 1, 0 }
  0x4e   : > { %s226_s11 = sand.u32 1, %s1853_s26   ;;  %s2591_s21 = sshll.u32 %s1869_s30, 3 }
  0x4f   : > { %s235_s3 = sadd.s32 %s1865_s29, %s2591_s21  ;;  %s1364_s9 = sshll.u32 %s226_s11, 5 }
  0x50   : > { %s1366_s28 = sshll.u32 %s235_s3, 7  ;;  %s2592_s0 = sld [smem:[#allocation24_spill]] }
  0x51   : > { %s230_s1 = scalar_lea.vmem [#allocation3], %s1364_s9  ;;  %p2593_p1 = scmp.lt.s32.totalorder %s1873_s6, 4 }
  0x52   : > { %s238_s14 = sshll.u32 %s230_s1, 4  ;;  %s227_s24 = scalar_lea.sflag [#allocation4], %s226_s11  ;;  %s239_s14 = int_to_ptr.vmem [resolvable:$true] %s238_s14 }
  0x53   : > { %p2127_p2 = pnand %p2593_p1, %p54_p6  ;;  %s1674_s26 = scalar_lea.vmem %s239_s14, 512 }
  0x54   : > { %p1675_p9 = scmp.ne.s32.totalorder %s239_s14, %s1674_s26  ;;  %s1879_s21 = smov [#allocation3]  }
  0x55   : > { %p1663_p8 = pneg %p2127_p2  ;;  %s1679_s3 = sshll.u32 %s1879_s21, 4  ;;  %s1680_s3 = int_to_ptr.vmem [resolvable:$false] %s1679_s3 }
  0x56   : > { %s237_s17 = scalar_lea.hbm %s2592_s0, %s1366_s28  ;;  %s1681_s8 = scalar_lea.vmem %s1680_s3, 1024 }
  0x57   : > { %p1677_p10 = pnand %p1675_p9, %p1663_p8  ;;  %p1682_p13 = scmp.lt.s32.totalorder %s239_s14, %s1680_s3 }
  0x58   : > { %p1683_p3 = scmp.lt.s32.totalorder %s1681_s8, %s1674_s26 }
  0x59   : > { %p1678_p12 = pneg %p1677_p10 }
  0x5a   : > { %p1684_p7 = por %p1683_p3, %p1682_p13 }
  0x5c   : > { %p1685_p4 = pnand %p1684_p7, %p1678_p12 }
  0x5e   : > { %1688 = shalt.err (!%p1685_p4)
}
  0x5f   : > { %s2595_s1 = smov 8   ;;  %s2596_s16 = smov 128  }
  0x60   : > { %s2597_s11 = smov 256   ;;  %s113_s26 = sadd.s32 1, %s1829_s20 }
  0x61   : > { %1493 = dma.hbm_to_vmem [thread:$0]  (!%p2127_p2), %s237_s17, 512, %s239_s14, %s227_s24, %s2597_s11, %s2596_s16, %s2595_s1  }
  0x62   : > { %p120_p6 = scmp.ne.s32.totalorder %s1829_s20, %s1825_s19  ;;  %p126_p4 = scmp.ne.s32.totalorder %s1825_s19, %s1821_s18 }
  0x63   : > { %s275_s23 = sand.u32 1, %s1829_s20   ;;  %p2598_p1 = scmp.eq.s32.totalorder %s1873_s6, 0 }
  0x64   : > { %p2599_p9 = scmp.eq.s32.totalorder %s1991_s7, 0  ;;  %s1371_s28 = sshll.u32 %s275_s23, 5 }
  0x65   : > { %p122_p8 = por %p120_p6, %p2598_p1  ;;  %s2601_s21 = sshll.u32 %s1869_s30, 10 }
  0x66   : > { %p2148_p10 = por %p126_p4, %p2599_p9  ;;  %s1817_s3 = sadd.s32 128, %s2601_s21 }
  0x67   : > { %s277_s8 = scalar_lea.vmem [#allocation8], %s1371_s28  ;;  %p2602_p12 = scmp.eq.s32.totalorder %s2007_s12, 0 }
  0x68   : > { %s288_s0 = sshll.u32 %s277_s8, 4  ;;  %s287_s18 = scalar_lea.hbm %s2537_s2, %s1817_s3  ;;  %s289_s0 = int_to_ptr.vmem [resolvable:$true] %s288_s0 }
  0x69   : > { %s2157_s29 = scalar_select %p2602_p12, %s1829_s20, %s113_s26  }
  0x6a   : > { %p2603_p2 = scmp.lt.s32.totalorder %s1873_s6, 4  ;;  %s1702_s23 = scalar_lea.vmem %s289_s0, 512 }
  0x6b   : > { %p1703_p7 = scmp.ne.s32.totalorder %s289_s0, %s1702_s23  ;;  %s1880_s12 = smov [#allocation8]  }
  0x6c   : > { %p2164_p13 = pnand %p2603_p2, %p122_p8  ;;  %s1707_s26 = sshll.u32 %s1880_s12, 4  ;;  %s1708_s26 = int_to_ptr.vmem [resolvable:$false] %s1707_s26 }
  0x6d   : > { %s1709_s28 = scalar_lea.vmem %s1708_s26, 1024  ;;  %p1710_p1 = scmp.lt.s32.totalorder %s289_s0, %s1708_s26 }
  0x6e   : > { %p1691_p3 = pneg %p2164_p13  ;;  %p1711_p9 = scmp.lt.s32.totalorder %s1709_s28, %s1702_s23 }
  0x70   : > { %p1705_p6 = pnand %p1703_p7, %p1691_p3  ;;  %p1712_p12 = por %p1711_p9, %p1710_p1 }
  0x72   : > { %p1706_p4 = pneg %p1705_p6 }
  0x74   : > { %p1713_p0 = pnand %p1712_p12, %p1706_p4 }
  0x76   : > { %1716 = shalt.err (!%p1713_p0)
}
  0x77   : > { %1499 = dma.hbm_to_vmem [thread:$0]  (!%p2164_p13), %s287_s18, 512, %s289_s0, %s2058_s10, %s2597_s11, %s2596_s16, %s2595_s1  }
  0x78   : > { %300 = sbr.rel (%p2086_p5) target bundleno = 867 (0x363), region = 40  ;;  %s2179_s21 = sand.u32 (!%p2086_p5), 1, %s1849_s25  }
  0x79   : > { %s1375_s3 = sshll.u32 (!%p2086_p5), %s2179_s21, 5  ;;  %s303_s8 = scalar_lea.sflag (!%p2086_p5), [#allocation4], %s2179_s21 }
  0x7a   : > { %s2185_s24 = scalar_lea.vmem (!%p2086_p5), [#allocation3], %s1375_s3 }
  0x7d   : > { %1800 = dma.done.wait (%p2106_p11), %s303_s8, 512  }
  0x7e   : > { %1802 = vsyncadd (%p2106_p11), %s303_s8, 4294966784  ;;  %s311_s0 = sand.u32 1, %s1991_s7   ;;  %s313_s10 = sand.u32 1, %s1837_s22  }
  0x7f   : > { %s1376_s5 = sshll.u32 %s313_s10, 5  ;;  %s312_s1 = scalar_lea.sflag [#allocation7], %s311_s0 }
  0x80   : > { %s2193_s16 = scalar_lea.vmem [#allocation6], %s1376_s5  ;;  %p2605_p5 = scmp.ne.s32.totalorder %s2577_s15, 0 }
  0x82   : > { %1804 = dma.done.wait (%p2605_p5), %s312_s1, 512  }
  0x83   : > { %1806 = vsyncadd (%p2605_p5), %s312_s1, 4294966784  ;;  %s322_s11 = sand.u32 1, %s1825_s19  }
  0x84   : > { %s1377_s17 = sshll.u32 %s322_s11, 5 }
  0x85   : > { %s2200_s4 = scalar_lea.vmem [#allocation8], %s1377_s17 }
  0x86   : > { %1808 = dma.done.wait (%p2148_p10), %s312_s1, 512  }
  0x87   : > { %1810 = vsyncadd (%p2148_p10), %s312_s1, 4294966784  ;;  %vm367_vm0 = vcmask 146432   ;;  %vm369_vm1 = vcmask 140288   ;;  %v1881_v0 = vmov 0.0   ;;  %v379_v1 = vld [vmem:[%s2185_s24 + $0x10] sm:$0xff]  ;;  %v377_v2 = vld [vmem:[%s2185_s24] sm:$0xff] }
  0x88   : > { %373 = vst.msk [vmem:[#allocation2 + $0x20] sm:$0xff] %vm367_vm0, %v1881_v0  ;;  %368 = vst.msk [vmem:[#allocation2] sm:$0xff] %vm367_vm0, %v1881_v0  ;;  %s1882_s7 = smov 1   ;;  %v380_v3 = vld [vmem:[%s2185_s24 + $0x18] sm:$0xff]  ;;  %v378_v4 = vld [vmem:[%s2185_s24 + $0x8] sm:$0xff]  ;;  %vm397_vm2 = vcmask 138248  }
  0x89   : > { %374 = vst.msk [vmem:[#allocation2 + $0x28] sm:$0x3] %vm369_vm1, %v1881_v0  ;;  %370 = vst.msk [vmem:[#allocation2 + $0x8] sm:$0x3] %vm369_vm1, %v1881_v0  ;;  %389 = vrot.lane.b32.xlu1 %v379_v1, %s1882_s7  ;;  %385 = vrot.lane.b32.xlu0 %v377_v2, %s1882_s7  ;;  %s2212_s15 = scalar_lea.vmem [#allocation9], %s1375_s3  ;;  %s2606_s9 = sld [smem:[#allocation17_spill]] }
  0x8a   : > { %371 = vst.msk [vmem:[#allocation2 + $0x10] sm:$0xff] %vm367_vm0, %v1881_v0  ;;  %375 = vst.msk [vmem:[#allocation2 + $0x30] sm:$0xff] %vm367_vm0, %v1881_v0 }
  0x8b   : > { %372 = vst.msk [vmem:[#allocation2 + $0x18] sm:$0x3] %vm369_vm1, %v1881_v0  ;;  %376 = vst.msk [vmem:[#allocation2 + $0x38] sm:$0x3] %vm369_vm1, %v1881_v0 }
  0x8d   : > { %391 = vrot.lane.b32.xlu1 %v380_v3, %s1882_s7  ;;  %387 = vrot.lane.b32.xlu0 %v378_v4, %s1882_s7 }
  0x8f   : > { %p1379_p11 = scmp.le.s32.totalorder %s2606_s9, 0 }
  0x90   : > { %s1883_s18 = smov (!%p1379_p11), 1  }
  0xfb   : > { %v390_v5 = vpop.permute.xlu1 %389  ;;  %v386_v6 = vpop.permute.xlu0 %385 }
  0xfc   : > { %400 = vst.msk [vmem:[#allocation2 + $0x21] sm:$0xff] %vm397_vm2, %v390_v5  ;;  %398 = vst.msk [vmem:[#allocation2 + $0x1] sm:$0xff] %vm397_vm2, %v386_v6  ;;  %405 = sbr.rel (%p1379_p11) target bundleno = 378 (0x17a), region = 56 }
  0xff   : > { %v392_v7 = vpop.permute.xlu1 %391  ;;  %v388_v8 = vpop.permute.xlu0 %387 }
 0x100   : > { %401 = vst.msk [vmem:[#allocation2 + $0x31] sm:$0xff] %vm397_vm2, %v392_v7  ;;  %399 = vst.msk [vmem:[#allocation2 + $0x11] sm:$0xff] %vm397_vm2, %v388_v8 }
 0x101   : > { %v408_v9 = vld [vmem:[%s2193_s16 + $0x17] sm:$0x1]  ;;  %v406_v10 = vld [vmem:[%s2193_s16 + $0x7] sm:$0x1]  ;;  %v409_v11 = vld [vmem:[%s2193_s16 + $0x1f] sm:$0x1] }
 0x102   : > { %418 = vrot.lane.b32.xlu1 %v408_v9, %s1883_s18  ;;  %414 = vrot.lane.b32.xlu0 %v406_v10, %s1883_s18  ;;  %v407_v12 = vld [vmem:[%s2193_s16 + $0xf] sm:$0x1]  ;;  %vm426_vm3 = vcmask 131080  }
 0x106   : > { %420 = vrot.lane.b32.xlu1 %v409_v11, %s1883_s18  ;;  %416 = vrot.lane.b32.xlu0 %v407_v12, %s1883_s18 }
 0x174   : > { %v419_v13 = vpop.permute.xlu1 %418  ;;  %v415_v14 = vpop.permute.xlu0 %414 }
 0x175   : > { %429 = vst.msk [vmem:[#allocation2 + $0x20] sm:$0x1] %vm426_vm3, %v419_v13  ;;  %427 = vst.msk [vmem:[#allocation2] sm:$0x1] %vm426_vm3, %v415_v14 }
 0x178   : > { %v421_v15 = vpop.permute.xlu1 %420  ;;  %v417_v16 = vpop.permute.xlu0 %416 }
 0x179   : > { %430 = vst.msk [vmem:[#allocation2 + $0x30] sm:$0x1] %vm426_vm3, %v421_v15  ;;  %428 = vst.msk [vmem:[#allocation2 + $0x10] sm:$0x1] %vm426_vm3, %v417_v16 }
 0x17a PF: > { %s2607_s14 = sld [smem:[#allocation17_spill]] }
 0x180   : > { %p1380_p0 = scmp.ge.s32.totalorder %s2607_s14, 1 }
 0x181   : > { %s1884_s23 = smov (!%p1380_p0), 1  }
 0x182   : > { %434 = sbr.rel (%p1380_p0) target bundleno = 512 (0x200), region = 60 }
 0x187   : > { %v437_v17 = vld [vmem:[%s2200_s4 + $0x10] sm:$0x1]  ;;  %v435_v18 = vld [vmem:[%s2200_s4] sm:$0x1]  ;;  %v438_v19 = vld [vmem:[%s2200_s4 + $0x18] sm:$0x1] }
 0x188   : > { %447 = vrot.lane.b32.xlu1 %v437_v17, %s1884_s23  ;;  %443 = vrot.lane.b32.xlu0 %v435_v18, %s1884_s23  ;;  %v436_v20 = vld [vmem:[%s2200_s4 + $0x8] sm:$0x1]  ;;  %vm455_vm4 = vcmask 131080  }
 0x18c   : > { %449 = vrot.lane.b32.xlu1 %v438_v19, %s1884_s23  ;;  %445 = vrot.lane.b32.xlu0 %v436_v20, %s1884_s23 }
 0x1fa   : > { %v448_v21 = vpop.permute.xlu1 %447  ;;  %v444_v22 = vpop.permute.xlu0 %443 }
 0x1fb   : > { %458 = vst.msk [vmem:[#allocation2 + $0x29] sm:$0x1] %vm455_vm4, %v448_v21  ;;  %456 = vst.msk [vmem:[#allocation2 + $0x9] sm:$0x1] %vm455_vm4, %v444_v22 }
 0x1fe   : > { %v450_v23 = vpop.permute.xlu1 %449  ;;  %v446_v24 = vpop.permute.xlu0 %445 }
 0x1ff   : > { %459 = vst.msk [vmem:[#allocation2 + $0x39] sm:$0x1] %vm455_vm4, %v450_v23  ;;  %457 = vst.msk [vmem:[#allocation2 + $0x19] sm:$0x1] %vm455_vm4, %v446_v24 }
 0x200 PF: > { %s2608_s28 = sld [smem:[#allocation26_spill]]  ;;  %v1885_v27 = vmov 0   ;;  %v462_v8 = vld [vmem:[#allocation2 + $0x20] sm:$0xff]  ;;  %v463_v14 = vld [vmem:[#allocation2 + $0x30] sm:$0xff]  ;;  %s1886_s0 = smov 127   ;;  %vm1203_vm5 = vcmask 130048  }
 0x201   : > { %1632 = vset.pattern.permute.xlu1 %v1885_v27  ;;  %1631 = vset.pattern.permute.xlu0 %v1885_v27  ;;  %s2610_s8 = sld [smem:[#allocation27_spill]]  ;;  %v460_v9 = vld [vmem:[#allocation2] sm:$0xff]  ;;  %v461_v15 = vld [vmem:[#allocation2 + $0x10] sm:$0xff]  ;;  %s1887_s10 = smov 126  }
 0x202   : > { %s2611_s26 = sld [smem:[#allocation18_spill]]  ;;  %s1223_s5 = sshll.u32 %s2212_s15, 4  ;;  %s2454_s5 = int_to_ptr.vmem [resolvable:$true] %s1223_s5 }
 0x203   : > { %s2613_s11 = sld [smem:[#allocation28_spill]]  ;;  %s1209_s4 = scalar_lea.sflag [#allocation5], %s2179_s21 }
 0x204   : > { %s1717_s7 = scalar_lea.vmem %s2454_s5, 512  ;;  %p2614_p10 = scmp.ne.s32.totalorder %s2589_s27, 0 }
 0x205   : > { %p1718_p8 = scmp.ne.s32.totalorder %s2454_s5, %s1717_s7  ;;  %s1888_s9 = smov [#allocation9]  }
 0x206   : > { %s2609_s3 = smov %s2608_s28  ;;  %v1383_v25 = vld [vmem:[%s2608_s28 + $0x2] ss:$0 sm:$0xff]  ;;  %s2612_s28 = sld [smem:[#allocation17_spill]] }
 0x207   : > { %v1381_v26 = vld [vmem:[%s2609_s3] ss:$0 sm:$0xff]  ;;  %497 = vperm.xlu1 %1632, %v1383_v25   ;;  %v1384_v28 = vld [vmem:[%s2609_s3 + $0x3] ss:$0 sm:$0xff]  ;;  %v1382_v29 = vld [vmem:[%s2609_s3 + $0x1] ss:$0 sm:$0xff]  ;;  %p1719_p2 = pnand %p1718_p8, %p2614_p10 }
 0x208   : > { %489 = vperm.xlu0 %1631, %v1381_v26   ;;  %v1390_v30 = vld [vmem:[%s2609_s3 + $0x5] ss:$0 sm:$0xff]  ;;  %v1389_v31 = vld [vmem:[%s2609_s3 + $0x4] ss:$0 sm:$0xff]  ;;  %v1392_v32 = vld [vmem:[%s2609_s3 + $0x7] ss:$0 sm:$0xff] }
 0x209   : > { %v1391_v33 = vld [vmem:[%s2609_s3 + $0x6] ss:$0 sm:$0xff]  ;;  %v1398_v34 = vld [vmem:[%s2609_s3 + $0x9] ss:$0 sm:$0xff]  ;;  %v1397_v35 = vld [vmem:[%s2609_s3 + $0x8] ss:$0 sm:$0xff]  ;;  %p1720_p13 = pneg %p1719_p2 }
 0x20a   : > { %v1400_v36 = vld [vmem:[%s2609_s3 + $0xb] ss:$0 sm:$0xff]  ;;  %v1399_v37 = vld [vmem:[%s2609_s3 + $0xa] ss:$0 sm:$0xff]  ;;  %v1406_v38 = vld [vmem:[%s2609_s3 + $0xd] ss:$0 sm:$0xff] }
 0x20b   : > { %501 = vperm.xlu1 %1632, %v1384_v28   ;;  %v1405_v39 = vld [vmem:[%s2609_s3 + $0xc] ss:$0 sm:$0xff]  ;;  %v1408_v40 = vld [vmem:[%s2609_s3 + $0xf] ss:$0 sm:$0xff]  ;;  %v1407_v41 = vld [vmem:[%s2609_s3 + $0xe] ss:$0 sm:$0xff] }
 0x20c   : > { %493 = vperm.xlu0 %1631, %v1382_v29   ;;  %v1414_v42 = vld [vmem:[%s2609_s3 + $0x11] ss:$0 sm:$0xff]  ;;  %v1413_v43 = vld [vmem:[%s2609_s3 + $0x10] ss:$0 sm:$0xff]  ;;  %v1416_v44 = vld [vmem:[%s2609_s3 + $0x13] ss:$0 sm:$0xff] }
 0x20d   : > { %v1415_v45 = vld [vmem:[%s2609_s3 + $0x12] ss:$0 sm:$0xff]  ;;  %v1422_v46 = vld [vmem:[%s2609_s3 + $0x15] ss:$0 sm:$0xff]  ;;  %v1421_v47 = vld [vmem:[%s2609_s3 + $0x14] ss:$0 sm:$0xff] }
 0x20e   : > { %v1424_v48 = vld [vmem:[%s2609_s3 + $0x17] ss:$0 sm:$0xff]  ;;  %v1423_v49 = vld [vmem:[%s2609_s3 + $0x16] ss:$0 sm:$0xff]  ;;  %v1438_v50 = vld [vmem:[%s2609_s3 + $0x1d] ss:$0 sm:$0xff] }
 0x20f   : > { %542 = vperm.xlu1 %1632, %v1390_v30   ;;  %v1437_v51 = vld [vmem:[%s2609_s3 + $0x1c] ss:$0 sm:$0xff]  ;;  %v1445_v52 = vld [vmem:[%s2609_s3 + $0x20] ss:$0 sm:$0xff]  ;;  %v1439_v53 = vld [vmem:[%s2609_s3 + $0x1e] ss:$0 sm:$0xff] }
 0x210   : > { %538 = vperm.xlu0 %1631, %v1389_v31   ;;  %v1440_v54 = vld [vmem:[%s2609_s3 + $0x1f] ss:$0 sm:$0xff]  ;;  %v1446_v55 = vld [vmem:[%s2609_s3 + $0x21] ss:$0 sm:$0xff]  ;;  %v1448_v56 = vld [vmem:[%s2609_s3 + $0x23] ss:$0 sm:$0xff] }
 0x211   : > { %v1447_v57 = vld [vmem:[%s2609_s3 + $0x22] ss:$0 sm:$0xff]  ;;  %v1430_v58 = vld [vmem:[%s2609_s3 + $0x19] ss:$0 sm:$0xff]  ;;  %v1429_v59 = vld [vmem:[%s2609_s3 + $0x18] ss:$0 sm:$0xff] }
 0x212   : > { %v1432_v60 = vld [vmem:[%s2609_s3 + $0x1b] ss:$0 sm:$0xff]  ;;  %v1431_v61 = vld [vmem:[%s2609_s3 + $0x1a] ss:$0 sm:$0xff]  ;;  %v1450_v62 = vld [vmem:[%s2610_s8 + $0x1] ss:$0 sm:$0xff] }
 0x213   : > { %550 = vperm.xlu1 %1632, %v1392_v32   ;;  %v1449_v63 = vld [vmem:[%s2610_s8] ss:$0 sm:$0xff]  ;;  %v1452_v0 = vld [vmem:[%s2610_s8 + $0x3] ss:$0 sm:$0xff]  ;;  %v1451_v1 = vld [vmem:[%s2610_s8 + $0x2] ss:$0 sm:$0xff] }
 0x214   : > { %546 = vperm.xlu0 %1631, %v1391_v33   ;;  %v1458_v2 = vld [vmem:[%s2610_s8 + $0x5] ss:$0 sm:$0xff]  ;;  %v1457_v3 = vld [vmem:[%s2610_s8 + $0x4] ss:$0 sm:$0xff]  ;;  %v1460_v4 = vld [vmem:[%s2610_s8 + $0x7] ss:$0 sm:$0xff] }
 0x215   : > { %v1459_v5 = vld [vmem:[%s2610_s8 + $0x6] ss:$0 sm:$0xff]  ;;  %v1466_v6 = vld [vmem:[%s2610_s8 + $0x9] ss:$0 sm:$0xff]  ;;  %v1465_v7 = vld [vmem:[%s2610_s8 + $0x8] ss:$0 sm:$0xff] }
 0x216   : > { %s1478_s24 = sshll.u32 %s2611_s26, 3  ;;  %s1721_s18 = sshll.u32 %s1888_s9, 4  ;;  %s1722_s18 = int_to_ptr.vmem [resolvable:$false] %s1721_s18 }
 0x217   : > { %607 = vperm.xlu1 %1632, %v1398_v34   ;;  %s1723_s14 = scalar_lea.vmem %s1722_s18, 1024  ;;  %p1724_p3 = scmp.lt.s32.totalorder %s2454_s5, %s1722_s18 }
 0x218   : > { %603 = vperm.xlu0 %1631, %v1397_v35   ;;  %p1725_p7 = scmp.lt.s32.totalorder %s1723_s14, %s1717_s7 }
 0x21a   : > { %p1726_p6 = por %p1725_p7, %p1724_p3 }
 0x21b   : > { %615 = vperm.xlu1 %1632, %v1400_v36   ;;  %v643_v36 = vld [vmem:[#allocation2 + $0x11] sm:$0xff] }
 0x21c   : > { %611 = vperm.xlu0 %1631, %v1399_v37   ;;  %v642_v37 = vld [vmem:[#allocation2 + $0x1] sm:$0xff]  ;;  %p1727_p4 = pnand %p1726_p6, %p1720_p13 }
 0x21f   : > { %676 = vperm.xlu1 %1632, %v1406_v38  }
 0x220   : > { %672 = vperm.xlu0 %1631, %v1405_v39  }
 0x223   : > { %684 = vperm.xlu1 %1632, %v1408_v40  }
 0x224   : > { %680 = vperm.xlu0 %1631, %v1407_v41  }
 0x227   : > { %725 = vperm.xlu1 %1632, %v1414_v42   ;;  %v645_v42 = vld [vmem:[#allocation2 + $0x31] sm:$0xff] }
 0x228   : > { %721 = vperm.xlu0 %1631, %v1413_v43   ;;  %v644_v43 = vld [vmem:[#allocation2 + $0x21] sm:$0xff] }
 0x22b   : > { %733 = vperm.xlu1 %1632, %v1416_v44  }
 0x22c   : > { %729 = vperm.xlu0 %1631, %v1415_v45  }
 0x22f   : > { %790 = vperm.xlu1 %1632, %v1422_v46  }
 0x230   : > { %786 = vperm.xlu0 %1631, %v1421_v47  }
 0x233   : > { %798 = vperm.xlu1 %1632, %v1424_v48  }
 0x234   : > { %794 = vperm.xlu0 %1631, %v1423_v49  }
 0x237   : > { %908 = vperm.xlu1 %1632, %v1438_v50  }
 0x238   : > { %904 = vperm.xlu0 %1631, %v1437_v51  }
 0x23b   : > { %969 = vperm.xlu1 %1632, %v1445_v52  }
 0x23c   : > { %912 = vperm.xlu0 %1631, %v1439_v53  }
 0x23f   : > { %916 = vperm.xlu1 %1632, %v1440_v54  }
 0x240   : > { %973 = vperm.xlu0 %1631, %v1446_v55  }
 0x243   : > { %981 = vperm.xlu1 %1632, %v1448_v56  }
 0x244   : > { %977 = vperm.xlu0 %1631, %v1447_v57  }
 0x247   : > { %859 = vperm.xlu1 %1632, %v1430_v58  }
 0x248   : > { %855 = vperm.xlu0 %1631, %v1429_v59  }
 0x24b   : > { %867 = vperm.xlu1 %1632, %v1432_v60  }
 0x24c   : > { %863 = vperm.xlu0 %1631, %v1431_v61  }
 0x24f   : > { %1037 = vperm.xlu1 %1632, %v1450_v62  }
 0x250   : > { %1033 = vperm.xlu0 %1631, %v1449_v63  }
 0x253   : > { %1045 = vperm.xlu1 %1632, %v1452_v0   ;;  %v826_v0 = vld [vmem:[#allocation2 + $0x12] sm:$0xff] }
 0x254   : > { %1041 = vperm.xlu0 %1631, %v1451_v1   ;;  %v825_v1 = vld [vmem:[#allocation2 + $0x2] sm:$0xff] }
 0x257   : > { %1086 = vperm.xlu1 %1632, %v1458_v2  }
 0x258   : > { %1082 = vperm.xlu0 %1631, %v1457_v3  }
 0x25b   : > { %1094 = vperm.xlu1 %1632, %v1460_v4  }
 0x25c   : > { %1090 = vperm.xlu0 %1631, %v1459_v5  }
 0x25f   : > { %1135 = vperm.xlu1 %1632, %v1466_v6   ;;  %v827_v6 = vld [vmem:[#allocation2 + $0x22] sm:$0xff] }
 0x260   : > { %1131 = vperm.xlu0 %1631, %v1465_v7  }
 0x282   : > { %v498_v10 = vpop.permute.xlu1 %497 }
 0x283   : > { %v490_v11 = vpop.permute.xlu0 %489  ;;  %v2362_v12 = vmul.f32 %v498_v10, %v462_v8  ;;  %v828_v10 = vld [vmem:[#allocation2 + $0x32] sm:$0xff] }
 0x284   : > { %v2364_v13 = vmul.f32 %v490_v11, %v460_v9 }
 0x286   : > { %v502_v16 = vpop.permute.xlu1 %501 }
 0x287   : > { %v494_v17 = vpop.permute.xlu0 %493  ;;  %v2366_v18 = vmul.f32 %v502_v16, %v463_v14 }
 0x288   : > { %v2368_v19 = vmul.f32 %v494_v17, %v461_v15 }
 0x28a   : > { %v543_v20 = vpop.permute.xlu1 %542 }
 0x28b   : > { %v539_v21 = vpop.permute.xlu0 %538  ;;  %v554_v22 = vmul.f32 %v543_v20, %v461_v15 }
 0x28c   : > { %v553_v23 = vmul.f32 %v539_v21, %v460_v9  ;;  %v1468_v21 = vld [vmem:[%s2610_s8 + $0xb] ss:$0 sm:$0xff] }
 0x28d   : > { %563 = vrot.lane.b32.xlu1 %v554_v22, %s1886_s0 }
 0x28e   : > { %561 = vrot.lane.b32.xlu0 %v553_v23, %s1886_s0  ;;  %v551_v24 = vpop.permute.xlu1 %550 }
 0x28f   : > { %v547_v25 = vpop.permute.xlu0 %546  ;;  %v556_v26 = vmul.f32 %v551_v24, %v463_v14 }
 0x290   : > { %v555_v27 = vmul.f32 %v547_v25, %v462_v8  ;;  %v1473_v25 = vld [vmem:[%s2610_s8 + $0xc] ss:$0 sm:$0xff] }
 0x291   : > { %567 = vrot.lane.b32.xlu1 %v556_v26, %s1886_s0 }
 0x292   : > { %565 = vrot.lane.b32.xlu0 %v555_v27, %s1886_s0  ;;  %v608_v28 = vpop.permute.xlu1 %607 }
 0x293   : > { %v604_v29 = vpop.permute.xlu0 %603  ;;  %v619_v30 = vmul.f32 %v608_v28, %v461_v15  ;;  %v1467_v15 = vld [vmem:[%s2610_s8 + $0xa] ss:$0 sm:$0xff] }
 0x294   : > { %v618_v31 = vmul.f32 %v604_v29, %v460_v9 }
 0x295   : > { %628 = vrot.lane.b32.xlu1 %v619_v30, %s1887_s10 }
 0x296   : > { %626 = vrot.lane.b32.xlu0 %v618_v31, %s1887_s10  ;;  %v616_v32 = vpop.permute.xlu1 %615  ;;  %v1474_v31 = vld [vmem:[%s2610_s8 + $0xd] ss:$0 sm:$0xff] }
 0x297   : > { %v612_v33 = vpop.permute.xlu0 %611  ;;  %v621_v34 = vmul.f32 %v616_v32, %v463_v14  ;;  %v1475_v32 = vld [vmem:[%s2610_s8 + $0xe] ss:$0 sm:$0xff] }
 0x298   : > { %v620_v35 = vmul.f32 %v612_v33, %v462_v8 }
 0x299   : > { %632 = vrot.lane.b32.xlu1 %v621_v34, %s1887_s10 }
 0x29a   : > { %630 = vrot.lane.b32.xlu0 %v620_v35, %s1887_s10  ;;  %v677_v38 = vpop.permute.xlu1 %676  ;;  %v1476_v35 = vld [vmem:[%s2610_s8 + $0xf] ss:$0 sm:$0xff] }
 0x29b   : > { %v673_v39 = vpop.permute.xlu0 %672  ;;  %v2378_v40 = vmul.f32 %v677_v38, %v643_v36 }
 0x29c   : > { %v2380_v41 = vmul.f32 %v673_v39, %v642_v37 }
 0x29e   : > { %v685_v44 = vpop.permute.xlu1 %684 }
 0x29f   : > { %v681_v45 = vpop.permute.xlu0 %680  ;;  %v2382_v46 = vmul.f32 %v685_v44, %v645_v42 }
 0x2a0   : > { %v2384_v47 = vmul.f32 %v681_v45, %v644_v43 }
 0x2a2   : > { %v726_v48 = vpop.permute.xlu1 %725 }
 0x2a3   : > { %v722_v49 = vpop.permute.xlu0 %721  ;;  %v737_v50 = vmul.f32 %v726_v48, %v643_v36 }
 0x2a4   : > { %v736_v51 = vmul.f32 %v722_v49, %v642_v37 }
 0x2a5   : > { %746 = vrot.lane.b32.xlu1 %v737_v50, %s1886_s0 }
 0x2a6   : > { %744 = vrot.lane.b32.xlu0 %v736_v51, %s1886_s0  ;;  %v734_v52 = vpop.permute.xlu1 %733 }
 0x2a7   : > { %v730_v53 = vpop.permute.xlu0 %729  ;;  %v739_v54 = vmul.f32 %v734_v52, %v645_v42 }
 0x2a8   : > { %v738_v55 = vmul.f32 %v730_v53, %v644_v43 }
 0x2a9   : > { %750 = vrot.lane.b32.xlu1 %v739_v54, %s1886_s0 }
 0x2aa   : > { %748 = vrot.lane.b32.xlu0 %v738_v55, %s1886_s0  ;;  %v791_v56 = vpop.permute.xlu1 %790 }
 0x2ab   : > { %v787_v57 = vpop.permute.xlu0 %786  ;;  %v802_v58 = vmul.f32 %v791_v56, %v643_v36 }
 0x2ac   : > { %v801_v59 = vmul.f32 %v787_v57, %v642_v37 }
 0x2ad   : > { %811 = vrot.lane.b32.xlu1 %v802_v58, %s1887_s10 }
 0x2ae   : > { %809 = vrot.lane.b32.xlu0 %v801_v59, %s1887_s10  ;;  %v799_v60 = vpop.permute.xlu1 %798 }
 0x2af   : > { %v795_v61 = vpop.permute.xlu0 %794  ;;  %v804_v62 = vmul.f32 %v799_v60, %v645_v42 }
 0x2b0   : > { %v803_v63 = vmul.f32 %v795_v61, %v644_v43 }
 0x2b1   : > { %815 = vrot.lane.b32.xlu1 %v804_v62, %s1887_s10 }
 0x2b2   : > { %813 = vrot.lane.b32.xlu0 %v803_v63, %s1887_s10  ;;  %v909_v2 = vpop.permute.xlu1 %908 }
 0x2b3   : > { %v905_v3 = vpop.permute.xlu0 %904  ;;  %v920_v4 = vmul.f32 %v909_v2, %v826_v0 }
 0x2b4   : > { %v919_v5 = vmul.f32 %v905_v3, %v825_v1 }
 0x2b5   : > { %929 = vrot.lane.b32.xlu1 %v920_v4, %s1886_s0 }
 0x2b6   : > { %927 = vrot.lane.b32.xlu0 %v919_v5, %s1886_s0  ;;  %v970_v7 = vpop.permute.xlu1 %969 }
 0x2b7   : > { %v913_v8 = vpop.permute.xlu0 %912  ;;  %v984_v22 = vmul.f32 %v970_v7, %v825_v1 }
 0x2b8   : > { %v921_v9 = vmul.f32 %v913_v8, %v827_v6 }
 0x2ba   : > { %931 = vrot.lane.b32.xlu0 %v921_v9, %s1886_s0  ;;  %v917_v11 = vpop.permute.xlu1 %916 }
 0x2bb   : > { %v974_v14 = vpop.permute.xlu0 %973  ;;  %v922_v16 = vmul.f32 %v917_v11, %v828_v10 }
 0x2bc   : > { %v985_v26 = vmul.f32 %v974_v14, %v826_v0 }
 0x2bd   : > { %933 = vrot.lane.b32.xlu1 %v922_v16, %s1886_s0  ;;  %s1220_s0 = sadd.s32 %s2612_s28, %s1478_s24 }
 0x2be   : > { %1139 = vperm.xlu0 %1631, %v1467_v15   ;;  %v982_v17 = vpop.permute.xlu1 %981 }
 0x2bf   : > { %v978_v20 = vpop.permute.xlu0 %977  ;;  %v987_v37 = vmul.f32 %v982_v17, %v828_v10 }
 0x2c0   : > { %v986_v36 = vmul.f32 %v978_v20, %v827_v6 }
 0x2c1   : > { %1143 = vperm.xlu1 %1632, %v1468_v21  }
 0x2c2   : > { %992 = vrot.lane.b32.xlu0 %v984_v22, %s1887_s10  ;;  %v860_v23 = vpop.permute.xlu1 %859 }
 0x2c3   : > { %v856_v24 = vpop.permute.xlu0 %855  ;;  %v871_v27 = vmul.f32 %v860_v23, %v826_v0 }
 0x2c4   : > { %v870_v28 = vmul.f32 %v856_v24, %v825_v1 }
 0x2c5   : > { %994 = vrot.lane.b32.xlu1 %v985_v26, %s1887_s10 }
 0x2c6   : > { %1180 = vperm.xlu0 %1631, %v1473_v25   ;;  %v868_v29 = vpop.permute.xlu1 %867 }
 0x2c7   : > { %v864_v30 = vpop.permute.xlu0 %863  ;;  %v873_v33 = vmul.f32 %v868_v29, %v828_v10 }
 0x2c8   : > { %v872_v34 = vmul.f32 %v864_v30, %v827_v6 }
 0x2c9   : > { %1184 = vperm.xlu1 %1632, %v1474_v31  }
 0x2ca   : > { %1188 = vperm.xlu0 %1631, %v1475_v32   ;;  %v2420_v38 = vpop.permute.xlu1 %1037 }
 0x2cb   : > { %v1034_v39 = vpop.permute.xlu0 %1033 }
 0x2cd   : > { %1192 = vperm.xlu1 %1632, %v1476_v35  }
 0x2ce   : > { %996 = vrot.lane.b32.xlu0 %v986_v36, %s1887_s10  ;;  %v2422_v42 = vpop.permute.xlu1 %1045 }
 0x2cf   : > { %v1042_v43 = vpop.permute.xlu0 %1041 }
 0x2d1   : > { %998 = vrot.lane.b32.xlu1 %v987_v37, %s1887_s10  ;;  %s1479_s10 = sshll.u32 %s1220_s0, 7 }
 0x2d2   : > { %v2424_v44 = vpop.permute.xlu1 %1086  ;;  %s2452_s17 = scalar_lea.hbm %s2613_s11, %s1479_s10 }
 0x2d3   : > { %v1083_v45 = vpop.permute.xlu0 %1082 }
 0x2d6   : > { %v2426_v48 = vpop.permute.xlu1 %1094 }
 0x2d7   : > { %v1091_v49 = vpop.permute.xlu0 %1090 }
 0x2da   : > { %v2428_v50 = vpop.permute.xlu1 %1135 }
 0x2db   : > { %v2430_v51 = vpop.permute.xlu0 %1131 }
 0x2ff   : > { %v564_v52 = vpop.permute.xlu1 %563 }
 0x300   : > { %v562_v53 = vpop.permute.xlu0 %561  ;;  %v574_v56 = vadd.f32 %v564_v52, %v2368_v19 }
 0x301   : > { %v573_v57 = vadd.f32 %v562_v53, %v2364_v13 }
 0x303   : > { %v568_v54 = vpop.permute.xlu1 %567 }
 0x304   : > { %v566_v55 = vpop.permute.xlu0 %565  ;;  %v576_v62 = vadd.f32 %v568_v54, %v2366_v18 }
 0x305   : > { %v575_v63 = vadd.f32 %v566_v55, %v2362_v12 }
 0x307   : > { %v629_v58 = vpop.permute.xlu1 %628 }
 0x308   : > { %v627_v59 = vpop.permute.xlu0 %626  ;;  %v639_v60 = vadd.f32 %v629_v58, %v574_v56 }
 0x309   : > { %v638_v61 = vadd.f32 %v627_v59, %v573_v57 }
 0x30a   : > { %v692_v0 = vadd.f32 %v2378_v40, %v639_v60 }
 0x30b   : > { %v691_v1 = vadd.f32 %v2380_v41, %v638_v61  ;;  %v633_v2 = vpop.permute.xlu1 %632 }
 0x30c   : > { %v631_v3 = vpop.permute.xlu0 %630  ;;  %v641_v4 = vadd.f32 %v633_v2, %v576_v62 }
 0x30d   : > { %v640_v5 = vadd.f32 %v631_v3, %v575_v63 }
 0x30e   : > { %v694_v19 = vadd.f32 %v2382_v46, %v641_v4 }
 0x30f   : > { %v693_v13 = vadd.f32 %v2384_v47, %v640_v5 }
 0x317   : > { %v747_v6 = vpop.permute.xlu1 %746 }
 0x318   : > { %v745_v7 = vpop.permute.xlu0 %744  ;;  %v757_v10 = vadd.f32 %v747_v6, %v692_v0 }
 0x319   : > { %v756_v18 = vadd.f32 %v745_v7, %v691_v1 }
 0x31b   : > { %v751_v8 = vpop.permute.xlu1 %750 }
 0x31c   : > { %v749_v9 = vpop.permute.xlu0 %748  ;;  %v759_v15 = vadd.f32 %v751_v8, %v694_v19 }
 0x31d   : > { %v758_v41 = vadd.f32 %v749_v9, %v693_v13 }
 0x31f   : > { %v812_v11 = vpop.permute.xlu1 %811 }
 0x320   : > { %v810_v12 = vpop.permute.xlu0 %809  ;;  %v822_v14 = vadd.f32 %v812_v11, %v757_v10 }
 0x321   : > { %v821_v40 = vadd.f32 %v810_v12, %v756_v18 }
 0x322   : > { %v875_v16 = vadd.f32 %v871_v27, %v822_v14 }
 0x323   : > { %v874_v17 = vadd.f32 %v870_v28, %v821_v40  ;;  %v816_v20 = vpop.permute.xlu1 %815 }
 0x324   : > { %v814_v21 = vpop.permute.xlu0 %813  ;;  %v824_v22 = vadd.f32 %v816_v20, %v759_v15 }
 0x325   : > { %v823_v46 = vadd.f32 %v814_v21, %v758_v41 }
 0x326   : > { %v877_v47 = vadd.f32 %v873_v33, %v824_v22 }
 0x327   : > { %v876_v23 = vadd.f32 %v872_v34, %v823_v46  ;;  %v930_v25 = vpop.permute.xlu1 %929 }
 0x328   : > { %v928_v24 = vpop.permute.xlu0 %927  ;;  %v940_v37 = vadd.f32 %v930_v25, %v875_v16 }
 0x329   : > { %v939_v31 = vadd.f32 %v928_v24, %v874_v17 }
 0x32c   : > { %v932_v26 = vpop.permute.xlu0 %931 }
 0x32d   : > { %v941_v1 = vadd.f32 %v932_v26, %v876_v23 }
 0x32f   : > { %v934_v29 = vpop.permute.xlu1 %933 }
 0x339   : > { %v1140_v30 = vpop.permute.xlu0 %1139 }
 0x33c   : > { %v1144_v32 = vpop.permute.xlu1 %1143 }
 0x33d   : > { %v993_v35 = vpop.permute.xlu0 %992 }
 0x33e   : > { %v1004_v36 = vadd.f32 %v993_v35, %v939_v31 }
 0x340   : > { %v995_v52 = vpop.permute.xlu1 %994  ;;  %v1048_v28 = vmul.f32 %v1034_v39, %v1004_v36  ;;  %v1049_v54 = vmul.f32 %v2420_v38, %v1004_v36  ;;  %v1050_v55 = vmul.f32 %v1042_v43, %v1004_v36  ;;  %v1051_v33 = vmul.f32 %v2422_v42, %v1004_v36 }
 0x341   : > { %v1181_v53 = vpop.permute.xlu0 %1180  ;;  %v1005_v27 = vadd.f32 %v995_v52, %v940_v37 }
 0x343   : > { %v1097_v34 = vmul.f32 %v1083_v45, %v1005_v27  ;;  %v1098_v56 = vmul.f32 %v2424_v44, %v1005_v27  ;;  %v1099_v57 = vmul.f32 %v1091_v49, %v1005_v27  ;;  %v1100_v58 = vmul.f32 %v2426_v48, %v1005_v27 }
 0x344   : > { %v1185_v59 = vpop.permute.xlu1 %1184  ;;  %v942_v48 = vadd.f32 %v934_v29, %v877_v47 }
 0x345   : > { %v1189_v60 = vpop.permute.xlu0 %1188  ;;  %v1101_v61 = vadd.f32 %v1097_v34, %v1048_v28  ;;  %v1102_v62 = vadd.f32 %v1098_v56, %v1049_v54  ;;  %v1103_v63 = vadd.f32 %v1099_v57, %v1050_v55  ;;  %v1104_v0 = vadd.f32 %v1100_v58, %v1051_v33 }
 0x348   : > { %v1193_v39 = vpop.permute.xlu1 %1192 }
 0x349   : > { %v997_v38 = vpop.permute.xlu0 %996 }
 0x34a   : > { %v1006_v43 = vadd.f32 %v997_v38, %v941_v1 }
 0x34c   : > { %v1146_v42 = vmul.f32 %v2430_v51, %v1006_v43  ;;  %v1147_v44 = vmul.f32 %v2428_v50, %v1006_v43  ;;  %v1148_v45 = vmul.f32 %v1140_v30, %v1006_v43  ;;  %v1149_v49 = vmul.f32 %v1144_v32, %v1006_v43  ;;  %v999_v2 = vpop.permute.xlu1 %998 }
 0x34d   : > { %v1007_v13 = vadd.f32 %v999_v2, %v942_v48 }
 0x34e   : > { %v1150_v3 = vadd.f32 %v1146_v42, %v1101_v61  ;;  %v1151_v4 = vadd.f32 %v1147_v44, %v1102_v62  ;;  %v1152_v5 = vadd.f32 %v1148_v45, %v1103_v63  ;;  %v1153_v19 = vadd.f32 %v1149_v49, %v1104_v0 }
 0x34f   : > { %v1195_v6 = vmul.f32 %v1181_v53, %v1007_v13  ;;  %v1196_v51 = vmul.f32 %v1185_v59, %v1007_v13  ;;  %v1197_v7 = vmul.f32 %v1189_v60, %v1007_v13  ;;  %v1198_v50 = vmul.f32 %v1193_v39, %v1007_v13 }
 0x351   : > { %v1199_v8 = vadd.f32 %v1195_v6, %v1150_v3  ;;  %v1200_v9 = vadd.f32 %v1196_v51, %v1151_v4  ;;  %v1201_v10 = vadd.f32 %v1197_v7, %v1152_v5  ;;  %v1202_v18 = vadd.f32 %v1198_v50, %v1153_v19 }
 0x353   : > { %1204 = vst.msk [vmem:[%s2212_s15] sm:$0xff] %vm1203_vm5, %v1199_v8  ;;  %1205 = vst.msk [vmem:[%s2212_s15 + $0x8] sm:$0xff] %vm1203_vm5, %v1200_v9 }
 0x354   : > { %1206 = vst.msk [vmem:[%s2212_s15 + $0x10] sm:$0xff] %vm1203_vm5, %v1201_v10  ;;  %1207 = vst.msk [vmem:[%s2212_s15 + $0x18] sm:$0xff] %vm1203_vm5, %v1202_v18 }
 0x355   : > { %1730 = shalt.err (!%p1727_p4)
}
 0x356   : > { %s1731_s15 = scalar_lea.hbm %s2452_s17, 512  ;;  %s1735_s26 = scalar_lea.hbm %s2613_s11, 2048 }
 0x357   : > { %p1732_p1 = scmp.ne.s32.totalorder %s2452_s17, %s1731_s15  ;;  %p1736_p5 = scmp.lt.s32.totalorder %s2452_s17, %s2613_s11 }
 0x358   : > { %p1737_p11 = scmp.lt.s32.totalorder %s1735_s26, %s1731_s15 }
 0x359   : > { %p1733_p9 = pnand %p1732_p1, %p2614_p10 }
 0x35a   : > { %p1738_p0 = por %p1737_p11, %p1736_p5 }
 0x35b   : > { %p1734_p12 = pneg %p1733_p9 }
 0x35d   : > { %p1739_p8 = pnand %p1738_p0, %p1734_p12 }
 0x35f   : > { %1742 = shalt.err (!%p1739_p8)
}
 0x360   : > { %s1889_s0 = smov 128   ;;  %s1890_s10 = smov 256  }
 0x361   : > { %s1891_s1 = smov 8  }
 0x362   : > { %1488 = dma.vmem_to_hbm [thread:$0]  (%p2614_p10), %s2454_s5, 512, %s2452_s17, %s1209_s4, %s1889_s0, %s1890_s10, %s1891_s1  }
 0x363 PF: > { %s2615_s16 = sld [smem:[#allocation15_spill]]  ;;  %p1505_p2 = scmp.ge.s32.totalorder %s1873_s6, 2 }
 0x364   : > { %p2616_p13 = scmp.ne.s32.totalorder %s2590_s13, 0 }
 0x366   : > { %p1501_p3 = pnand %p1505_p2, %p2616_p13 }
 0x368   : > { %p1502_p7 = pneg %p1501_p3 }
 0x369   : > { %s1238_s7 = sand.u32 1, %s2615_s16  }
 0x36a   : > { %s1239_s9 = scalar_lea.sflag [#allocation5], %s1238_s7 }
 0x36b   : > { %1812 = dma.done.wait (%p1502_p7), %s1239_s9, 512  }
 0x36c   : > { %1814 = vsyncadd (%p1502_p7), %s1239_s9, 4294966784  ;;  %s24_s6 = sadd.s32 1, %s1873_s6   ;;  %s2618_s27 = sld [smem:[#allocation14_spill]] }
 0x36d   : > { %p2488_p6 = scmp.ge.s32.totalorder %s24_s6, 6   ;;  %s2619_s23 = sld [smem:[#allocation22_spill]] }
 0x36e   : > { %s2620_s5 = sld [smem:[#allocation16_spill]]  ;;  %s2626_s18 = smov %s1825_s19 }
 0x36f   : > { %s2621_s26 = sld [smem:[#allocation23_spill]]  ;;  %s2627_s19 = smov %s1829_s20 }
 0x370   : > { %s2622_s13 = sld [smem:[#allocation19_spill]]  ;;  %s2628_s20 = smov %s2157_s29 }
 0x371   : > { %s2623_s17 = sld [smem:[#allocation20_spill]]  ;;  %s2629_s21 = smov %s1837_s22 }
 0x372   : > { %s2624_s4 = sld [smem:[#allocation21_spill]]  ;;  %s2630_s22 = smov %s2618_s27 }
 0x373   : > { %s2631_s24 = smov %s1849_s25  ;;  %s2634_s28 = smov %s1869_s30 }
 0x374   : > { %s2632_s25 = smov %s2620_s5  ;;  %23 = sbr.rel (!%p2488_p6) target bundleno = 18 (0x12), region = 128 }
 0x376   : > { %s2633_s27 = smov %s2622_s13 }
 0x377   : > { %s2635_s29 = smov %s2623_s17 }
 0x378   : > { %s2636_s30 = smov %s2624_s4 }
 0x379   :  { %1244 = vsyncpa [#allocation4], 1 }
 0x37a   :  { %1246 = vsyncpa [#allocation4 + $0x1], 1 }
 0x37b   :  { %1247 = vsyncpa [#allocation7], 1 }
 0x37c   :  { %1249 = vsyncpa [#allocation7 + $0x1], 1 }
 0x37d   :  { %1250 = vsyncpa [#allocation5], 1 }
 0x37e   :  { %1252 = vsyncpa [#allocation5 + $0x1], 1 }

</bundles_post_ra>
